<compile_context>
chip_gen: v7x
topology: tpu7x:2x2x1
jax: 0.10.0
libtpu: 0.0.40
codegen_flags: <defaults>
</compile_context>

<pallas_src>
import numpy as np
import jax
import jax.numpy as jnp
from jax.experimental import pallas as pl
from jax.experimental.pallas import tpu as pltpu

BN_EPS = 1e-5


def _vmem_spec():
    return pl.BlockSpec(memory_space=pltpu.MemorySpace.VMEM)


def _conv_out_width(w):
    # Conv2d(kernel=3, stride=2, pad=1) along W.
    return (w - 1) // 2 + 1


def _selection_matrices(n, w_in, w_out):
    """Constant 0/1 matrices: (S[kw] @ A) picks A's row at width 2*wo + kw - 1.

    Rows of A enumerate (batch, width) positions (width-major within batch);
    taps that land in the zero width-padding select nothing (all-zero row).
    """
    s = np.zeros((3, n * w_out, n * w_in), np.float32)
    for kw in range(3):
        for b in range(n):
            for wo in range(w_out):
                wi = 2 * wo + kw - 1
                if 0 <= wi < w_in:
                    s[kw, b * w_out + wo, b * w_in + wi] = 1.0
    return jnp.asarray(s)


# ---------------- fused Pallas kernel (whole network) ----------------

def _make_fused_kernel(cins, features_only):
    num_blocks = len(cins)

    def kernel(*refs):
        x_ref = refs[0]
        blk = refs[1:1 + 4 * num_blocks]
        idx = 1 + 4 * num_blocks
        if features_only:
            o_ref = refs[idx]
        else:
            wc_ref, bc_ref, o_ref = refs[idx], refs[idx + 1], refs[idx + 2]

        a = x_ref[...]                                    # (N*W, Cin) activation
        for l in range(num_blocks):                       # unrolled over blocks
            w_ref, g_ref, beta_ref, s_ref = blk[4 * l:4 * l + 4]
            cin = cins[l]
            acc = None
            for kw in range(3):                           # 3 taps of the kh==1 row
                wk = w_ref[kw]                            # (Cin, Cout)
                if cin == 1:                              # first block: outer product
                    p = a * wk                            # (M_in,1)*(1,Cout)
                else:
                    p = jnp.dot(a, wk, preferred_element_type=jnp.float32)
                t = jnp.dot(s_ref[kw], p, preferred_element_type=jnp.float32)
                acc = t if acc is None else acc + t
            # BatchNorm2d (training mode, biased var) with one-pass stats,
            # folded into a single per-channel scale/shift, then ReLU.
            mean = jnp.mean(acc, axis=0, keepdims=True)
            msq = jnp.mean(acc * acc, axis=0, keepdims=True)
            var = jnp.maximum(msq - mean * mean, 0.0)
            scale = g_ref[...] * jax.lax.rsqrt(var + BN_EPS)
            shift = beta_ref[...] - mean * scale
            a = jnp.maximum(acc * scale + shift, 0.0)

        if features_only:
            o_ref[...] = a
        else:
            o_ref[...] = (jnp.dot(a, wc_ref[...],
                                  preferred_element_type=jnp.float32)
                          + bc_ref[...])

    return kernel


# ---------------- host-side wrapper ----------------

def cnn4_2_forward(x, conv_params, cls_params, features_only=False):
    """Fused CNN4_2 forward. x: (N, 1, 1, W) NCHW float32."""
    N, cin0, H, W = x.shape
    # TODO(synk): only the H == 1 configuration (the one the classifier's
    # Linear(hidden_size) requires) is implemented; general H would need the
    # full 3x3 im2col path.
    assert H == 1 and cin0 == 1, "CNN4_2 configuration requires (N, 1, 1, W)"

    num_blocks = len(conv_params)
    widths = [W]
    for _ in range(num_blocks):
        widths.append(_conv_out_width(widths[-1]))
    hidden = conv_params[-1][0].shape[0]
    cins = [w.shape[1] for (w, _b, _g, _be) in conv_params]

    operands = [x.reshape(N * W, 1)]
    for l, (w, _b, gamma, beta) in enumerate(conv_params):
        # Only the kh == 1 row of the 3x3 kernel touches real data when H == 1
        # (kh == 0 / 2 multiply the zero height-padding).
        wk = jnp.transpose(w[:, :, 1, :], (2, 1, 0))      # (3, Cin, Cout)
        operands += [wk, gamma.reshape(1, -1), beta.reshape(1, -1),
                     _selection_matrices(N, widths[l], widths[l + 1])]
        # Conv bias intentionally NOT passed: it cancels exactly in the
        # following BatchNorm (mean absorbs it; variance unchanged).

    if features_only:
        out_shape = jax.ShapeDtypeStruct((N * widths[-1], hidden), jnp.float32)
    else:
        assert widths[-1] == 1, "classifier requires spatial dims to collapse"
        wc, bc = cls_params
        operands += [wc.T, bc.reshape(1, -1)]
        out_shape = jax.ShapeDtypeStruct((N, wc.shape[0]), jnp.float32)

    out = pl.pallas_call(
        _make_fused_kernel(cins, features_only),
        out_shape=out_shape,
        in_specs=[_vmem_spec()] * len(operands),
        out_specs=_vmem_spec(),
    )(*operands)

    if features_only:
        # l2l.nn.Flatten on NCHW: (N, C, 1, W_last) -> (N, C*W_last).
        wl = widths[-1]
        return out.reshape(N, wl, hidden).transpose(0, 2, 1).reshape(N, hidden * wl)
    return out


# ---------------- pure-JAX reference (for validation only) ----------------

def _reference_forward(x, conv_params, cls_params, features_only=False):
    for (w, b, g, beta) in conv_params:
        y = jax.lax.conv_general_dilated(
            x, w, window_strides=(1, 2), padding=((1, 1), (1, 1)),
            dimension_numbers=("NCHW", "OIHW", "NCHW"),
            precision=jax.lax.Precision.HIGHEST)
        y = y + b.reshape(1, -1, 1, 1)
        mean = jnp.mean(y, axis=(0, 2, 3), keepdims=True)
        var = jnp.mean(jnp.square(y - mean), axis=(0, 2, 3), keepdims=True)
        y = (y - mean) * jax.lax.rsqrt(var + BN_EPS)
        y = g.reshape(1, -1, 1, 1) * y + beta.reshape(1, -1, 1, 1)
        x = jnp.maximum(y, 0.0)
    feats = x.reshape(x.shape[0], -1)
    if features_only:
        return feats
    wc, bc = cls_params
    return jnp.dot(feats, wc.T, precision=jax.lax.Precision.HIGHEST) + bc


# ---------------- deterministic parameter init ----------------

def xavier_uniform(key, shape, fan_in, fan_out):
    bound = (6.0 / (fan_in + fan_out)) ** 0.5
    return jax.random.uniform(key, shape, jnp.float32, -bound, bound)


def init_params(key, hidden, output_size, layers=4):
    conv_params = []
    cin = 1
    for _ in range(layers):
        key, kw, kg = jax.random.split(key, 3)
        w = xavier_uniform(kw, (hidden, cin, 3, 3), cin * 9, hidden * 9)
        b = jnp.zeros((hidden,), jnp.float32)                     # maml_init_
        gamma = jax.random.uniform(kg, (hidden,), jnp.float32, 0.0, 1.0)
        beta = jnp.zeros((hidden,), jnp.float32)
        conv_params.append((w, b, gamma, beta))
        cin = hidden
    key, kc = jax.random.split(key)
    wc = xavier_uniform(kc, (output_size, hidden), hidden, output_size)
    bc = jnp.zeros((output_size,), jnp.float32)
    return conv_params, (wc, bc)


if __name__ == "__main__":
    key = jax.random.PRNGKey(0)
    kx, kp = jax.random.split(key)

    hidden_size, output_size = 32, 5
    # N=2, Cin=1, H=1, W=16: each block halves W (16->8->4->2->1) while H
    # stays 1, so the flattened features equal hidden_size as the classifier's
    # Linear(hidden_size, output_size) requires.
    x = jax.random.normal(kx, (2, 1, 1, 16), jnp.float32)
    conv_params, cls_params = init_params(kp, hidden_size, output_size)

    forward = jax.jit(lambda xx, cp, clp: cnn4_2_forward(xx, cp, clp))
    out = forward(x, conv_params, cls_params)
    jax.block_until_ready(out)
    assert out.shape == (2, output_size), out.shape

    ref = _reference_forward(x, conv_params, cls_params)
    assert jnp.allclose(out, ref, atol=3e-2, rtol=3e-2), (
        float(jnp.max(jnp.abs(out - ref))))
    print("KERNEL_OK")
</pallas_src>

<mosaic_0001>
module attributes {stable_mosaic.version = 11 : i64} {
  func.func @kernel(%arg0: memref<32x1xf32, #tpu.memory_space<vmem>>, %arg1: memref<3x1x32xf32, #tpu.memory_space<vmem>>, %arg2: memref<1x32xf32, #tpu.memory_space<vmem>>, %arg3: memref<1x32xf32, #tpu.memory_space<vmem>>, %arg4: memref<3x16x32xf32, #tpu.memory_space<vmem>>, %arg5: memref<3x32x32xf32, #tpu.memory_space<vmem>>, %arg6: memref<1x32xf32, #tpu.memory_space<vmem>>, %arg7: memref<1x32xf32, #tpu.memory_space<vmem>>, %arg8: memref<3x8x16xf32, #tpu.memory_space<vmem>>, %arg9: memref<3x32x32xf32, #tpu.memory_space<vmem>>, %arg10: memref<1x32xf32, #tpu.memory_space<vmem>>, %arg11: memref<1x32xf32, #tpu.memory_space<vmem>>, %arg12: memref<3x4x8xf32, #tpu.memory_space<vmem>>, %arg13: memref<3x32x32xf32, #tpu.memory_space<vmem>>, %arg14: memref<1x32xf32, #tpu.memory_space<vmem>>, %arg15: memref<1x32xf32, #tpu.memory_space<vmem>>, %arg16: memref<3x2x4xf32, #tpu.memory_space<vmem>>, %arg17: memref<32x5xf32, #tpu.memory_space<vmem>>, %arg18: memref<1x5xf32, #tpu.memory_space<vmem>>, %arg19: memref<2x5xf32, #tpu.memory_space<vmem>>) attributes {dimension_semantics = [], scalar_prefetch = 0 : i64, scratch_operands = 0 : i64, tpu.core_type = #tpu.core_type<tc>} {
    %c0 = arith.constant 0 : index
    %c0_0 = arith.constant 0 : index
    %0 = vector.load %arg0[%c0, %c0_0] : memref<32x1xf32, #tpu.memory_space<vmem>>, vector<32x1xf32>
    %c0_1 = arith.constant 0 : index
    %c0_2 = arith.constant 0 : index
    %c0_3 = arith.constant 0 : index
    %1 = vector.load %arg1[%c0_1, %c0_2, %c0_3] : memref<3x1x32xf32, #tpu.memory_space<vmem>>, vector<1x1x32xf32>
    %2 = vector.shape_cast %1 : vector<1x1x32xf32> to vector<1x32xf32>
    %3 = vector.broadcast %0 : vector<32x1xf32> to vector<32x32xf32>
    %4 = vector.broadcast %2 : vector<1x32xf32> to vector<32x32xf32>
    %5 = arith.mulf %3, %4 : vector<32x32xf32>
    %c0_4 = arith.constant 0 : index
    %c0_5 = arith.constant 0 : index
    %c0_6 = arith.constant 0 : index
    %6 = vector.load %arg4[%c0_4, %c0_5, %c0_6] : memref<3x16x32xf32, #tpu.memory_space<vmem>>, vector<1x16x32xf32>
    %7 = vector.shape_cast %6 : vector<1x16x32xf32> to vector<16x32xf32>
    %cst = arith.constant dense<0.000000e+00> : vector<16x32xf32>
    %8 = tpu.matmul %7, %5, %cst {dimension_numbers = #tpu.dot_dimension_numbers<[1], [0], [0], [1], [0, 0, 1, 1], [], []>} : vector<16x32xf32>, vector<32x32xf32>, vector<16x32xf32> -> vector<16x32xf32>
    %c1 = arith.constant 1 : index
    %c0_7 = arith.constant 0 : index
    %c0_8 = arith.constant 0 : index
    %9 = vector.load %arg1[%c1, %c0_7, %c0_8] : memref<3x1x32xf32, #tpu.memory_space<vmem>>, vector<1x1x32xf32>
    %10 = vector.shape_cast %9 : vector<1x1x32xf32> to vector<1x32xf32>
    %11 = vector.broadcast %0 : vector<32x1xf32> to vector<32x32xf32>
    %12 = vector.broadcast %10 : vector<1x32xf32> to vector<32x32xf32>
    %13 = arith.mulf %11, %12 : vector<32x32xf32>
    %c1_9 = arith.constant 1 : index
    %c0_10 = arith.constant 0 : index
    %c0_11 = arith.constant 0 : index
    %14 = vector.load %arg4[%c1_9, %c0_10, %c0_11] : memref<3x16x32xf32, #tpu.memory_space<vmem>>, vector<1x16x32xf32>
    %15 = vector.shape_cast %14 : vector<1x16x32xf32> to vector<16x32xf32>
    %cst_12 = arith.constant dense<0.000000e+00> : vector<16x32xf32>
    %16 = tpu.matmul %15, %13, %cst_12 {dimension_numbers = #tpu.dot_dimension_numbers<[1], [0], [0], [1], [0, 0, 1, 1], [], []>} : vector<16x32xf32>, vector<32x32xf32>, vector<16x32xf32> -> vector<16x32xf32>
    %17 = arith.addf %8, %16 : vector<16x32xf32>
    %c2 = arith.constant 2 : index
    %c0_13 = arith.constant 0 : index
    %c0_14 = arith.constant 0 : index
    %18 = vector.load %arg1[%c2, %c0_13, %c0_14] : memref<3x1x32xf32, #tpu.memory_space<vmem>>, vector<1x1x32xf32>
    %19 = vector.shape_cast %18 : vector<1x1x32xf32> to vector<1x32xf32>
    %20 = vector.broadcast %0 : vector<32x1xf32> to vector<32x32xf32>
    %21 = vector.broadcast %19 : vector<1x32xf32> to vector<32x32xf32>
    %22 = arith.mulf %20, %21 : vector<32x32xf32>
    %c2_15 = arith.constant 2 : index
    %c0_16 = arith.constant 0 : index
    %c0_17 = arith.constant 0 : index
    %23 = vector.load %arg4[%c2_15, %c0_16, %c0_17] : memref<3x16x32xf32, #tpu.memory_space<vmem>>, vector<1x16x32xf32>
    %24 = vector.shape_cast %23 : vector<1x16x32xf32> to vector<16x32xf32>
    %cst_18 = arith.constant dense<0.000000e+00> : vector<16x32xf32>
    %25 = tpu.matmul %24, %22, %cst_18 {dimension_numbers = #tpu.dot_dimension_numbers<[1], [0], [0], [1], [0, 0, 1, 1], [], []>} : vector<16x32xf32>, vector<32x32xf32>, vector<16x32xf32> -> vector<16x32xf32>
    %26 = arith.addf %17, %25 : vector<16x32xf32>
    %cst_19 = arith.constant dense<0.000000e+00> : vector<32xf32>
    %27 = vector.multi_reduction <add>, %26, %cst_19 [0] : vector<16x32xf32> to vector<32xf32>
    %28 = vector.shape_cast %27 : vector<32xf32> to vector<1x32xf32>
    %cst_20 = arith.constant 1.600000e+01 : f32
    %29 = vector.broadcast %cst_20 : f32 to vector<1x32xf32>
    %30 = arith.divf %28, %29 : vector<1x32xf32>
    %31 = arith.mulf %26, %26 : vector<16x32xf32>
    %cst_21 = arith.constant dense<0.000000e+00> : vector<32xf32>
    %32 = vector.multi_reduction <add>, %31, %cst_21 [0] : vector<16x32xf32> to vector<32xf32>
    %33 = vector.shape_cast %32 : vector<32xf32> to vector<1x32xf32>
    %cst_22 = arith.constant 1.600000e+01 : f32
    %34 = vector.broadcast %cst_22 : f32 to vector<1x32xf32>
    %35 = arith.divf %33, %34 : vector<1x32xf32>
    %36 = arith.mulf %30, %30 : vector<1x32xf32>
    %37 = arith.subf %35, %36 : vector<1x32xf32>
    %cst_23 = arith.constant 0.000000e+00 : f32
    %38 = vector.broadcast %cst_23 : f32 to vector<1x32xf32>
    %39 = arith.maximumf %37, %38 : vector<1x32xf32>
    %c0_24 = arith.constant 0 : index
    %c0_25 = arith.constant 0 : index
    %40 = vector.load %arg2[%c0_24, %c0_25] : memref<1x32xf32, #tpu.memory_space<vmem>>, vector<1x32xf32>
    %cst_26 = arith.constant 9.99999974E-6 : f32
    %41 = vector.broadcast %cst_26 : f32 to vector<1x32xf32>
    %42 = arith.addf %39, %41 : vector<1x32xf32>
    %43 = math.rsqrt %42 : vector<1x32xf32>
    %44 = arith.mulf %40, %43 : vector<1x32xf32>
    %c0_27 = arith.constant 0 : index
    %c0_28 = arith.constant 0 : index
    %45 = vector.load %arg3[%c0_27, %c0_28] : memref<1x32xf32, #tpu.memory_space<vmem>>, vector<1x32xf32>
    %46 = arith.mulf %30, %44 : vector<1x32xf32>
    %47 = arith.subf %45, %46 : vector<1x32xf32>
    %48 = vector.broadcast %44 : vector<1x32xf32> to vector<16x32xf32>
    %49 = arith.mulf %26, %48 : vector<16x32xf32>
    %50 = vector.broadcast %47 : vector<1x32xf32> to vector<16x32xf32>
    %51 = arith.addf %49, %50 : vector<16x32xf32>
    %cst_29 = arith.constant 0.000000e+00 : f32
    %52 = vector.broadcast %cst_29 : f32 to vector<16x32xf32>
    %53 = arith.maximumf %51, %52 : vector<16x32xf32>
    %c0_30 = arith.constant 0 : index
    %c0_31 = arith.constant 0 : index
    %c0_32 = arith.constant 0 : index
    %54 = vector.load %arg5[%c0_30, %c0_31, %c0_32] : memref<3x32x32xf32, #tpu.memory_space<vmem>>, vector<1x32x32xf32>
    %55 = vector.shape_cast %54 : vector<1x32x32xf32> to vector<32x32xf32>
    %cst_33 = arith.constant dense<0.000000e+00> : vector<16x32xf32>
    %56 = tpu.matmul %53, %55, %cst_33 {dimension_numbers = #tpu.dot_dimension_numbers<[1], [0], [0], [1], [0, 0, 1, 1], [], []>} : vector<16x32xf32>, vector<32x32xf32>, vector<16x32xf32> -> vector<16x32xf32>
    %c0_34 = arith.constant 0 : index
    %c0_35 = arith.constant 0 : index
    %c0_36 = arith.constant 0 : index
    %57 = vector.load %arg8[%c0_34, %c0_35, %c0_36] : memref<3x8x16xf32, #tpu.memory_space<vmem>>, vector<1x8x16xf32>
    %58 = vector.shape_cast %57 : vector<1x8x16xf32> to vector<8x16xf32>
    %cst_37 = arith.constant dense<0.000000e+00> : vector<8x32xf32>
    %59 = tpu.matmul %58, %56, %cst_37 {dimension_numbers = #tpu.dot_dimension_numbers<[1], [0], [0], [1], [0, 0, 1, 1], [], []>} : vector<8x16xf32>, vector<16x32xf32>, vector<8x32xf32> -> vector<8x32xf32>
    %c1_38 = arith.constant 1 : index
    %c0_39 = arith.constant 0 : index
    %c0_40 = arith.constant 0 : index
    %60 = vector.load %arg5[%c1_38, %c0_39, %c0_40] : memref<3x32x32xf32, #tpu.memory_space<vmem>>, vector<1x32x32xf32>
    %61 = vector.shape_cast %60 : vector<1x32x32xf32> to vector<32x32xf32>
    %cst_41 = arith.constant dense<0.000000e+00> : vector<16x32xf32>
    %62 = tpu.matmul %53, %61, %cst_41 {dimension_numbers = #tpu.dot_dimension_numbers<[1], [0], [0], [1], [0, 0, 1, 1], [], []>} : vector<16x32xf32>, vector<32x32xf32>, vector<16x32xf32> -> vector<16x32xf32>
    %c1_42 = arith.constant 1 : index
    %c0_43 = arith.constant 0 : index
    %c0_44 = arith.constant 0 : index
    %63 = vector.load %arg8[%c1_42, %c0_43, %c0_44] : memref<3x8x16xf32, #tpu.memory_space<vmem>>, vector<1x8x16xf32>
    %64 = vector.shape_cast %63 : vector<1x8x16xf32> to vector<8x16xf32>
    %cst_45 = arith.constant dense<0.000000e+00> : vector<8x32xf32>
    %65 = tpu.matmul %64, %62, %cst_45 {dimension_numbers = #tpu.dot_dimension_numbers<[1], [0], [0], [1], [0, 0, 1, 1], [], []>} : vector<8x16xf32>, vector<16x32xf32>, vector<8x32xf32> -> vector<8x32xf32>
    %66 = arith.addf %59, %65 : vector<8x32xf32>
    %c2_46 = arith.constant 2 : index
    %c0_47 = arith.constant 0 : index
    %c0_48 = arith.constant 0 : index
    %67 = vector.load %arg5[%c2_46, %c0_47, %c0_48] : memref<3x32x32xf32, #tpu.memory_space<vmem>>, vector<1x32x32xf32>
    %68 = vector.shape_cast %67 : vector<1x32x32xf32> to vector<32x32xf32>
    %cst_49 = arith.constant dense<0.000000e+00> : vector<16x32xf32>
    %69 = tpu.matmul %53, %68, %cst_49 {dimension_numbers = #tpu.dot_dimension_numbers<[1], [0], [0], [1], [0, 0, 1, 1], [], []>} : vector<16x32xf32>, vector<32x32xf32>, vector<16x32xf32> -> vector<16x32xf32>
    %c2_50 = arith.constant 2 : index
    %c0_51 = arith.constant 0 : index
    %c0_52 = arith.constant 0 : index
    %70 = vector.load %arg8[%c2_50, %c0_51, %c0_52] : memref<3x8x16xf32, #tpu.memory_space<vmem>>, vector<1x8x16xf32>
    %71 = vector.shape_cast %70 : vector<1x8x16xf32> to vector<8x16xf32>
    %cst_53 = arith.constant dense<0.000000e+00> : vector<8x32xf32>
    %72 = tpu.matmul %71, %69, %cst_53 {dimension_numbers = #tpu.dot_dimension_numbers<[1], [0], [0], [1], [0, 0, 1, 1], [], []>} : vector<8x16xf32>, vector<16x32xf32>, vector<8x32xf32> -> vector<8x32xf32>
    %73 = arith.addf %66, %72 : vector<8x32xf32>
    %cst_54 = arith.constant dense<0.000000e+00> : vector<32xf32>
    %74 = vector.multi_reduction <add>, %73, %cst_54 [0] : vector<8x32xf32> to vector<32xf32>
    %75 = vector.shape_cast %74 : vector<32xf32> to vector<1x32xf32>
    %cst_55 = arith.constant 8.000000e+00 : f32
    %76 = vector.broadcast %cst_55 : f32 to vector<1x32xf32>
    %77 = arith.divf %75, %76 : vector<1x32xf32>
    %78 = arith.mulf %73, %73 : vector<8x32xf32>
    %cst_56 = arith.constant dense<0.000000e+00> : vector<32xf32>
    %79 = vector.multi_reduction <add>, %78, %cst_56 [0] : vector<8x32xf32> to vector<32xf32>
    %80 = vector.shape_cast %79 : vector<32xf32> to vector<1x32xf32>
    %cst_57 = arith.constant 8.000000e+00 : f32
    %81 = vector.broadcast %cst_57 : f32 to vector<1x32xf32>
    %82 = arith.divf %80, %81 : vector<1x32xf32>
    %83 = arith.mulf %77, %77 : vector<1x32xf32>
    %84 = arith.subf %82, %83 : vector<1x32xf32>
    %cst_58 = arith.constant 0.000000e+00 : f32
    %85 = vector.broadcast %cst_58 : f32 to vector<1x32xf32>
    %86 = arith.maximumf %84, %85 : vector<1x32xf32>
    %c0_59 = arith.constant 0 : index
    %c0_60 = arith.constant 0 : index
    %87 = vector.load %arg6[%c0_59, %c0_60] : memref<1x32xf32, #tpu.memory_space<vmem>>, vector<1x32xf32>
    %cst_61 = arith.constant 9.99999974E-6 : f32
    %88 = vector.broadcast %cst_61 : f32 to vector<1x32xf32>
    %89 = arith.addf %86, %88 : vector<1x32xf32>
    %90 = math.rsqrt %89 : vector<1x32xf32>
    %91 = arith.mulf %87, %90 : vector<1x32xf32>
    %c0_62 = arith.constant 0 : index
    %c0_63 = arith.constant 0 : index
    %92 = vector.load %arg7[%c0_62, %c0_63] : memref<1x32xf32, #tpu.memory_space<vmem>>, vector<1x32xf32>
    %93 = arith.mulf %77, %91 : vector<1x32xf32>
    %94 = arith.subf %92, %93 : vector<1x32xf32>
    %95 = vector.broadcast %91 : vector<1x32xf32> to vector<8x32xf32>
    %96 = arith.mulf %73, %95 : vector<8x32xf32>
    %97 = vector.broadcast %94 : vector<1x32xf32> to vector<8x32xf32>
    %98 = arith.addf %96, %97 : vector<8x32xf32>
    %cst_64 = arith.constant 0.000000e+00 : f32
    %99 = vector.broadcast %cst_64 : f32 to vector<8x32xf32>
    %100 = arith.maximumf %98, %99 : vector<8x32xf32>
    %c0_65 = arith.constant 0 : index
    %c0_66 = arith.constant 0 : index
    %c0_67 = arith.constant 0 : index
    %101 = vector.load %arg9[%c0_65, %c0_66, %c0_67] : memref<3x32x32xf32, #tpu.memory_space<vmem>>, vector<1x32x32xf32>
    %102 = vector.shape_cast %101 : vector<1x32x32xf32> to vector<32x32xf32>
    %cst_68 = arith.constant dense<0.000000e+00> : vector<8x32xf32>
    %103 = tpu.matmul %100, %102, %cst_68 {dimension_numbers = #tpu.dot_dimension_numbers<[1], [0], [0], [1], [0, 0, 1, 1], [], []>} : vector<8x32xf32>, vector<32x32xf32>, vector<8x32xf32> -> vector<8x32xf32>
    %c0_69 = arith.constant 0 : index
    %c0_70 = arith.constant 0 : index
    %c0_71 = arith.constant 0 : index
    %104 = vector.load %arg12[%c0_69, %c0_70, %c0_71] : memref<3x4x8xf32, #tpu.memory_space<vmem>>, vector<1x4x8xf32>
    %105 = vector.shape_cast %104 : vector<1x4x8xf32> to vector<4x8xf32>
    %cst_72 = arith.constant dense<0.000000e+00> : vector<4x32xf32>
    %106 = tpu.matmul %105, %103, %cst_72 {dimension_numbers = #tpu.dot_dimension_numbers<[1], [0], [0], [1], [0, 0, 1, 1], [], []>} : vector<4x8xf32>, vector<8x32xf32>, vector<4x32xf32> -> vector<4x32xf32>
    %c1_73 = arith.constant 1 : index
    %c0_74 = arith.constant 0 : index
    %c0_75 = arith.constant 0 : index
    %107 = vector.load %arg9[%c1_73, %c0_74, %c0_75] : memref<3x32x32xf32, #tpu.memory_space<vmem>>, vector<1x32x32xf32>
    %108 = vector.shape_cast %107 : vector<1x32x32xf32> to vector<32x32xf32>
    %cst_76 = arith.constant dense<0.000000e+00> : vector<8x32xf32>
    %109 = tpu.matmul %100, %108, %cst_76 {dimension_numbers = #tpu.dot_dimension_numbers<[1], [0], [0], [1], [0, 0, 1, 1], [], []>} : vector<8x32xf32>, vector<32x32xf32>, vector<8x32xf32> -> vector<8x32xf32>
    %c1_77 = arith.constant 1 : index
    %c0_78 = arith.constant 0 : index
    %c0_79 = arith.constant 0 : index
    %110 = vector.load %arg12[%c1_77, %c0_78, %c0_79] : memref<3x4x8xf32, #tpu.memory_space<vmem>>, vector<1x4x8xf32>
    %111 = vector.shape_cast %110 : vector<1x4x8xf32> to vector<4x8xf32>
    %cst_80 = arith.constant dense<0.000000e+00> : vector<4x32xf32>
    %112 = tpu.matmul %111, %109, %cst_80 {dimension_numbers = #tpu.dot_dimension_numbers<[1], [0], [0], [1], [0, 0, 1, 1], [], []>} : vector<4x8xf32>, vector<8x32xf32>, vector<4x32xf32> -> vector<4x32xf32>
    %113 = arith.addf %106, %112 : vector<4x32xf32>
    %c2_81 = arith.constant 2 : index
    %c0_82 = arith.constant 0 : index
    %c0_83 = arith.constant 0 : index
    %114 = vector.load %arg9[%c2_81, %c0_82, %c0_83] : memref<3x32x32xf32, #tpu.memory_space<vmem>>, vector<1x32x32xf32>
    %115 = vector.shape_cast %114 : vector<1x32x32xf32> to vector<32x32xf32>
    %cst_84 = arith.constant dense<0.000000e+00> : vector<8x32xf32>
    %116 = tpu.matmul %100, %115, %cst_84 {dimension_numbers = #tpu.dot_dimension_numbers<[1], [0], [0], [1], [0, 0, 1, 1], [], []>} : vector<8x32xf32>, vector<32x32xf32>, vector<8x32xf32> -> vector<8x32xf32>
    %c2_85 = arith.constant 2 : index
    %c0_86 = arith.constant 0 : index
    %c0_87 = arith.constant 0 : index
    %117 = vector.load %arg12[%c2_85, %c0_86, %c0_87] : memref<3x4x8xf32, #tpu.memory_space<vmem>>, vector<1x4x8xf32>
    %118 = vector.shape_cast %117 : vector<1x4x8xf32> to vector<4x8xf32>
    %cst_88 = arith.constant dense<0.000000e+00> : vector<4x32xf32>
    %119 = tpu.matmul %118, %116, %cst_88 {dimension_numbers = #tpu.dot_dimension_numbers<[1], [0], [0], [1], [0, 0, 1, 1], [], []>} : vector<4x8xf32>, vector<8x32xf32>, vector<4x32xf32> -> vector<4x32xf32>
    %120 = arith.addf %113, %119 : vector<4x32xf32>
    %cst_89 = arith.constant dense<0.000000e+00> : vector<32xf32>
    %121 = vector.multi_reduction <add>, %120, %cst_89 [0] : vector<4x32xf32> to vector<32xf32>
    %122 = vector.shape_cast %121 : vector<32xf32> to vector<1x32xf32>
    %cst_90 = arith.constant 4.000000e+00 : f32
    %123 = vector.broadcast %cst_90 : f32 to vector<1x32xf32>
    %124 = arith.divf %122, %123 : vector<1x32xf32>
    %125 = arith.mulf %120, %120 : vector<4x32xf32>
    %cst_91 = arith.constant dense<0.000000e+00> : vector<32xf32>
    %126 = vector.multi_reduction <add>, %125, %cst_91 [0] : vector<4x32xf32> to vector<32xf32>
    %127 = vector.shape_cast %126 : vector<32xf32> to vector<1x32xf32>
    %cst_92 = arith.constant 4.000000e+00 : f32
    %128 = vector.broadcast %cst_92 : f32 to vector<1x32xf32>
    %129 = arith.divf %127, %128 : vector<1x32xf32>
    %130 = arith.mulf %124, %124 : vector<1x32xf32>
    %131 = arith.subf %129, %130 : vector<1x32xf32>
    %cst_93 = arith.constant 0.000000e+00 : f32
    %132 = vector.broadcast %cst_93 : f32 to vector<1x32xf32>
    %133 = arith.maximumf %131, %132 : vector<1x32xf32>
    %c0_94 = arith.constant 0 : index
    %c0_95 = arith.constant 0 : index
    %134 = vector.load %arg10[%c0_94, %c0_95] : memref<1x32xf32, #tpu.memory_space<vmem>>, vector<1x32xf32>
    %cst_96 = arith.constant 9.99999974E-6 : f32
    %135 = vector.broadcast %cst_96 : f32 to vector<1x32xf32>
    %136 = arith.addf %133, %135 : vector<1x32xf32>
    %137 = math.rsqrt %136 : vector<1x32xf32>
    %138 = arith.mulf %134, %137 : vector<1x32xf32>
    %c0_97 = arith.constant 0 : index
    %c0_98 = arith.constant 0 : index
    %139 = vector.load %arg11[%c0_97, %c0_98] : memref<1x32xf32, #tpu.memory_space<vmem>>, vector<1x32xf32>
    %140 = arith.mulf %124, %138 : vector<1x32xf32>
    %141 = arith.subf %139, %140 : vector<1x32xf32>
    %142 = vector.broadcast %138 : vector<1x32xf32> to vector<4x32xf32>
    %143 = arith.mulf %120, %142 : vector<4x32xf32>
    %144 = vector.broadcast %141 : vector<1x32xf32> to vector<4x32xf32>
    %145 = arith.addf %143, %144 : vector<4x32xf32>
    %cst_99 = arith.constant 0.000000e+00 : f32
    %146 = vector.broadcast %cst_99 : f32 to vector<4x32xf32>
    %147 = arith.maximumf %145, %146 : vector<4x32xf32>
    %c0_100 = arith.constant 0 : index
    %c0_101 = arith.constant 0 : index
    %c0_102 = arith.constant 0 : index
    %148 = vector.load %arg13[%c0_100, %c0_101, %c0_102] : memref<3x32x32xf32, #tpu.memory_space<vmem>>, vector<1x32x32xf32>
    %149 = vector.shape_cast %148 : vector<1x32x32xf32> to vector<32x32xf32>
    %cst_103 = arith.constant dense<0.000000e+00> : vector<4x32xf32>
    %150 = tpu.matmul %147, %149, %cst_103 {dimension_numbers = #tpu.dot_dimension_numbers<[1], [0], [0], [1], [0, 0, 1, 1], [], []>} : vector<4x32xf32>, vector<32x32xf32>, vector<4x32xf32> -> vector<4x32xf32>
    %c0_104 = arith.constant 0 : index
    %c0_105 = arith.constant 0 : index
    %c0_106 = arith.constant 0 : index
    %151 = vector.load %arg16[%c0_104, %c0_105, %c0_106] : memref<3x2x4xf32, #tpu.memory_space<vmem>>, vector<1x2x4xf32>
    %152 = vector.shape_cast %151 : vector<1x2x4xf32> to vector<2x4xf32>
    %cst_107 = arith.constant dense<0.000000e+00> : vector<2x32xf32>
    %153 = tpu.matmul %152, %150, %cst_107 {dimension_numbers = #tpu.dot_dimension_numbers<[1], [0], [0], [1], [0, 0, 1, 1], [], []>} : vector<2x4xf32>, vector<4x32xf32>, vector<2x32xf32> -> vector<2x32xf32>
    %c1_108 = arith.constant 1 : index
    %c0_109 = arith.constant 0 : index
    %c0_110 = arith.constant 0 : index
    %154 = vector.load %arg13[%c1_108, %c0_109, %c0_110] : memref<3x32x32xf32, #tpu.memory_space<vmem>>, vector<1x32x32xf32>
    %155 = vector.shape_cast %154 : vector<1x32x32xf32> to vector<32x32xf32>
    %cst_111 = arith.constant dense<0.000000e+00> : vector<4x32xf32>
    %156 = tpu.matmul %147, %155, %cst_111 {dimension_numbers = #tpu.dot_dimension_numbers<[1], [0], [0], [1], [0, 0, 1, 1], [], []>} : vector<4x32xf32>, vector<32x32xf32>, vector<4x32xf32> -> vector<4x32xf32>
    %c1_112 = arith.constant 1 : index
    %c0_113 = arith.constant 0 : index
    %c0_114 = arith.constant 0 : index
    %157 = vector.load %arg16[%c1_112, %c0_113, %c0_114] : memref<3x2x4xf32, #tpu.memory_space<vmem>>, vector<1x2x4xf32>
    %158 = vector.shape_cast %157 : vector<1x2x4xf32> to vector<2x4xf32>
    %cst_115 = arith.constant dense<0.000000e+00> : vector<2x32xf32>
    %159 = tpu.matmul %158, %156, %cst_115 {dimension_numbers = #tpu.dot_dimension_numbers<[1], [0], [0], [1], [0, 0, 1, 1], [], []>} : vector<2x4xf32>, vector<4x32xf32>, vector<2x32xf32> -> vector<2x32xf32>
    %160 = arith.addf %153, %159 : vector<2x32xf32>
    %c2_116 = arith.constant 2 : index
    %c0_117 = arith.constant 0 : index
    %c0_118 = arith.constant 0 : index
    %161 = vector.load %arg13[%c2_116, %c0_117, %c0_118] : memref<3x32x32xf32, #tpu.memory_space<vmem>>, vector<1x32x32xf32>
    %162 = vector.shape_cast %161 : vector<1x32x32xf32> to vector<32x32xf32>
    %cst_119 = arith.constant dense<0.000000e+00> : vector<4x32xf32>
    %163 = tpu.matmul %147, %162, %cst_119 {dimension_numbers = #tpu.dot_dimension_numbers<[1], [0], [0], [1], [0, 0, 1, 1], [], []>} : vector<4x32xf32>, vector<32x32xf32>, vector<4x32xf32> -> vector<4x32xf32>
    %c2_120 = arith.constant 2 : index
    %c0_121 = arith.constant 0 : index
    %c0_122 = arith.constant 0 : index
    %164 = vector.load %arg16[%c2_120, %c0_121, %c0_122] : memref<3x2x4xf32, #tpu.memory_space<vmem>>, vector<1x2x4xf32>
    %165 = vector.shape_cast %164 : vector<1x2x4xf32> to vector<2x4xf32>
    %cst_123 = arith.constant dense<0.000000e+00> : vector<2x32xf32>
    %166 = tpu.matmul %165, %163, %cst_123 {dimension_numbers = #tpu.dot_dimension_numbers<[1], [0], [0], [1], [0, 0, 1, 1], [], []>} : vector<2x4xf32>, vector<4x32xf32>, vector<2x32xf32> -> vector<2x32xf32>
    %167 = arith.addf %160, %166 : vector<2x32xf32>
    %cst_124 = arith.constant dense<0.000000e+00> : vector<32xf32>
    %168 = vector.multi_reduction <add>, %167, %cst_124 [0] : vector<2x32xf32> to vector<32xf32>
    %169 = vector.shape_cast %168 : vector<32xf32> to vector<1x32xf32>
    %cst_125 = arith.constant 2.000000e+00 : f32
    %170 = vector.broadcast %cst_125 : f32 to vector<1x32xf32>
    %171 = arith.divf %169, %170 : vector<1x32xf32>
    %172 = arith.mulf %167, %167 : vector<2x32xf32>
    %cst_126 = arith.constant dense<0.000000e+00> : vector<32xf32>
    %173 = vector.multi_reduction <add>, %172, %cst_126 [0] : vector<2x32xf32> to vector<32xf32>
    %174 = vector.shape_cast %173 : vector<32xf32> to vector<1x32xf32>
    %cst_127 = arith.constant 2.000000e+00 : f32
    %175 = vector.broadcast %cst_127 : f32 to vector<1x32xf32>
    %176 = arith.divf %174, %175 : vector<1x32xf32>
    %177 = arith.mulf %171, %171 : vector<1x32xf32>
    %178 = arith.subf %176, %177 : vector<1x32xf32>
    %cst_128 = arith.constant 0.000000e+00 : f32
    %179 = vector.broadcast %cst_128 : f32 to vector<1x32xf32>
    %180 = arith.maximumf %178, %179 : vector<1x32xf32>
    %c0_129 = arith.constant 0 : index
    %c0_130 = arith.constant 0 : index
    %181 = vector.load %arg14[%c0_129, %c0_130] : memref<1x32xf32, #tpu.memory_space<vmem>>, vector<1x32xf32>
    %cst_131 = arith.constant 9.99999974E-6 : f32
    %182 = vector.broadcast %cst_131 : f32 to vector<1x32xf32>
    %183 = arith.addf %180, %182 : vector<1x32xf32>
    %184 = math.rsqrt %183 : vector<1x32xf32>
    %185 = arith.mulf %181, %184 : vector<1x32xf32>
    %c0_132 = arith.constant 0 : index
    %c0_133 = arith.constant 0 : index
    %186 = vector.load %arg15[%c0_132, %c0_133] : memref<1x32xf32, #tpu.memory_space<vmem>>, vector<1x32xf32>
    %187 = arith.mulf %171, %185 : vector<1x32xf32>
    %188 = arith.subf %186, %187 : vector<1x32xf32>
    %189 = vector.broadcast %185 : vector<1x32xf32> to vector<2x32xf32>
    %190 = arith.mulf %167, %189 : vector<2x32xf32>
    %191 = vector.broadcast %188 : vector<1x32xf32> to vector<2x32xf32>
    %192 = arith.addf %190, %191 : vector<2x32xf32>
    %cst_134 = arith.constant 0.000000e+00 : f32
    %193 = vector.broadcast %cst_134 : f32 to vector<2x32xf32>
    %194 = arith.maximumf %192, %193 : vector<2x32xf32>
    %c0_135 = arith.constant 0 : index
    %c0_136 = arith.constant 0 : index
    %195 = vector.load %arg17[%c0_135, %c0_136] : memref<32x5xf32, #tpu.memory_space<vmem>>, vector<32x5xf32>
    %cst_137 = arith.constant dense<0.000000e+00> : vector<2x5xf32>
    %196 = tpu.matmul %194, %195, %cst_137 {dimension_numbers = #tpu.dot_dimension_numbers<[1], [0], [0], [1], [0, 0, 1, 1], [], []>} : vector<2x32xf32>, vector<32x5xf32>, vector<2x5xf32> -> vector<2x5xf32>
    %c0_138 = arith.constant 0 : index
    %c0_139 = arith.constant 0 : index
    %197 = vector.load %arg18[%c0_138, %c0_139] : memref<1x5xf32, #tpu.memory_space<vmem>>, vector<1x5xf32>
    %198 = vector.broadcast %197 : vector<1x5xf32> to vector<2x5xf32>
    %199 = arith.addf %196, %198 : vector<2x5xf32>
    %c0_140 = arith.constant 0 : index
    %c0_141 = arith.constant 0 : index
    %200 = vector.load %arg19[%c0_140, %c0_141] : memref<2x5xf32, #tpu.memory_space<vmem>>, vector<2x5xf32>
    tpu.vector_store %arg19[%c0_140, %c0_141], %199 {strides = array<i32>} : memref<2x5xf32, #tpu.memory_space<vmem>>, vector<2x5xf32>,
    return
  }
}

</mosaic_0001>

<bundles_post_ra>
// kernel: _lambda_.1
= control target key start
LH: loop header
LB: loop body
LE: loop exit
PB: predicated region body
PF: predicated region fallthrough
CT: control target
= control target key end

     0   :  { %s2985_s0 = inlined_call_operand.vmem [shape: f32[32,1], index: 0, kind: input, shape index: {}]   ;;  %s2986_s1 = inlined_call_operand.vmem [shape: f32[3,1,32], index: 1, kind: input, shape index: {}]   ;;  %s2987_s2 = inlined_call_operand.vmem [shape: f32[1,32], index: 2, kind: input, shape index: {}]   ;;  %s2988_s3 = inlined_call_operand.vmem [shape: f32[1,32], index: 3, kind: input, shape index: {}]   ;;  %s2989_s4 = inlined_call_operand.vmem [shape: f32[3,16,32], index: 4, kind: input, shape index: {}]   ;;  %s2990_s5 = inlined_call_operand.vmem [shape: f32[3,32,32], index: 5, kind: input, shape index: {}]   ;;  %s2991_s6 = inlined_call_operand.vmem [shape: f32[1,32], index: 6, kind: input, shape index: {}]   ;;  %s2992_s7 = inlined_call_operand.vmem [shape: f32[1,32], index: 7, kind: input, shape index: {}]   ;;  %s2993_s8 = inlined_call_operand.vmem [shape: f32[3,8,16], index: 8, kind: input, shape index: {}]   ;;  %s2994_s9 = inlined_call_operand.vmem [shape: f32[3,32,32], index: 9, kind: input, shape index: {}]   ;;  %s2995_s10 = inlined_call_operand.vmem [shape: f32[1,32], index: 10, kind: input, shape index: {}]   ;;  %s2996_s11 = inlined_call_operand.vmem [shape: f32[1,32], index: 11, kind: input, shape index: {}]   ;;  %s2997_s12 = inlined_call_operand.vmem [shape: f32[3,4,8], index: 12, kind: input, shape index: {}]   ;;  %s2998_s13 = inlined_call_operand.vmem [shape: f32[3,32,32], index: 13, kind: input, shape index: {}]   ;;  %s2999_s14 = inlined_call_operand.vmem [shape: f32[1,32], index: 14, kind: input, shape index: {}]   ;;  %s3000_s15 = inlined_call_operand.vmem [shape: f32[1,32], index: 15, kind: input, shape index: {}]   ;;  %s3001_s16 = inlined_call_operand.vmem [shape: f32[3,2,4], index: 16, kind: input, shape index: {}]   ;;  %s3002_s17 = inlined_call_operand.vmem [shape: f32[32,5], index: 17, kind: input, shape index: {}]   ;;  %s3003_s18 = inlined_call_operand.vmem [shape: f32[1,5], index: 18, kind: input, shape index: {}]   ;;  %s3004_s19 = inlined_call_operand.hbm [shape: f32[2,5], index: 19, kind: output, shape index: {}]  }
   0x1   :  { %3007 = sst [smem:[#allocation5_spill]] %s2985_s0 }
   0x2   :  { %3008 = sst [smem:[#allocation6_spill]] %s2986_s1 }
   0x3   :  { %3009 = sst [smem:[#allocation7_spill]] %s2987_s2 }
   0x4   :  { %3010 = sst [smem:[#allocation8_spill]] %s2988_s3 }
   0x5   :  { %s3011_s20 = sld [smem:[#allocation5_spill]]  ;;  %v2556_v2 = vmov 0  }
   0x6   :  { %2523 = vset.pattern.permute.xlu1 %v2556_v2  ;;  %2522 = vset.pattern.permute.xlu0 %v2556_v2 }
   0xb   :  { %v65_v0 = vld [vmem:[%s3011_s20 + $0x10] sm:$0xff]  ;;  %v63_v1 = vld [vmem:[%s3011_s20] sm:$0xff] }
   0xc   :  { %80 = vperm.xlu1 %2523, %v65_v0   ;;  %70 = vperm.xlu0 %2522, %v63_v1  }
   0xd   :  { %24 = vsyncpa [#allocation3], 0  ;;  %v66_v3 = vld [vmem:[%s3011_s20 + $0x18] sm:$0xff]  ;;  %v64_v4 = vld [vmem:[%s3011_s20 + $0x8] sm:$0xff]  ;;  %vm115_vm0 = vcmask 261120   ;;  %s3012_s28 = sld [smem:[#allocation6_spill]] }
   0xe   :  { %v2048_v5 = vld [vmem:[%s2989_s4 + $0x10] sm:$0xff]  ;;  %v2049_v23 = vld [vmem:[%s2989_s4 + $0x18] sm:$0xff]  ;;  %v98_v24 = vld [vmem:[%s2989_s4] sm:$0xff]  ;;  %s3013_s1 = sld [smem:[#allocation7_spill]]  ;;  %s3014_s2 = sld [smem:[#allocation8_spill]]  ;;  %vm2558_vm1 = vmmov 0  }
   0xf   :  { %2216 = vmatprep.mubr.msk.f32.mxu0 %vm115_vm0, %v2048_v5  ;;  %v99_v32 = vld [vmem:[%s2989_s4 + $0x8] sm:$0xff]  ;;  %v2056_v33 = vld [vmem:[%s2989_s4 + $0x20] sm:$0xff]  ;;  %v429_v42 = vld [vmem:[%s2990_s5 + $0x10] sm:$0xff]  ;;  %vm595_vm2 = vcmask 130048   ;;  %vm1096_vm3 = vcmask 64512   ;;  %vm1394_vm4 = vcmask 257024  }
  0x10   :  { %85 = vperm.xlu1 %2523, %v66_v3   ;;  %75 = vperm.xlu0 %2522, %v64_v4   ;;  %v2057_v35 = vld [vmem:[%s2989_s4 + $0x28] sm:$0xff]  ;;  %v427_v36 = vld [vmem:[%s2990_s5] sm:$0xff]  ;;  %v430_v43 = vld [vmem:[%s2990_s5 + $0x18] sm:$0xff]  ;;  %vm1597_vm5 = vcmask 1043456   ;;  %vm1593_vm6 = vcmask 31744   ;;  %vm1901_vm7 = vcmask 254976  }
  0x11   :  { %v428_v37 = vld [vmem:[%s2990_s5 + $0x8] sm:$0xff]  ;;  %v2071_v39 = vld [vmem:[%s2990_s5 + $0x40] sm:$0xff]  ;;  %v2073_v44 = vld [vmem:[%s2990_s5 + $0x50] sm:$0xff]  ;;  %v2430_v45 = vpack.c.bf16 %v430_v43, %v429_v42  ;;  %vm2029_vm8 = vcmask 33792  }
  0x12   :  { %v2426_v38 = vpack.c.bf16 %v428_v37, %v427_v36  ;;  %v2072_v40 = vld [vmem:[%s2990_s5 + $0x48] sm:$0xff]  ;;  %v2074_v46 = vld [vmem:[%s2990_s5 + $0x58] sm:$0xff]  ;;  %v2062_v48 = vld [vmem:[%s2990_s5 + $0x20] sm:$0xff]  ;;  %v2559_v36 = vmov 0.0  }
  0x13   :  { %v2047_v8 = vld [vmem:[%s3012_s28 + $0x1] ss:$0 sm:$0xff]  ;;  %v2045_v16 = vld [vmem:[%s3012_s28] ss:$0 sm:$0xff]  ;;  %v2055_v25 = vld [vmem:[%s3012_s28 + $0x2] ss:$0 sm:$0xff]  ;;  %v2448_v41 = vpack.c.bf16 %v2072_v40, %v2071_v39  ;;  %v2452_v47 = vpack.c.bf16 %v2074_v46, %v2073_v44 }
  0x14   :  { %2427 = vmatprep.subr.bf16.mxu1 %v2426_v38  ;;  %v2063_v49 = vld [vmem:[%s2990_s5 + $0x28] sm:$0xff] }
  0x15   :  { %2429 = vmatpush3.bf16.msra.mxu1 %v2426_v38  ;;  %v2434_v50 = vpack.c.bf16 %v2063_v49, %v2062_v48  ;;  %v2068_v46 = vld [vmem:[%s2993_s8 + $0x8] sm:$0xff]  ;;  %v2077_v48 = vld [vmem:[%s2993_s8 + $0x10] sm:$0xff]  ;;  %v2080_v49 = vld [vmem:[%s2994_s9 + $0x20] sm:$0xff] }
  0x16   :  { %2431 = vmatprep.subr.bf16.mxu1 %v2430_v45 }
  0x19   :  { %2433 = vmatpush3.bf16.msra.mxu1 %v2430_v45 }
  0x1a   :  { %2435 = vmatprep.subr.bf16.mxu1 %v2434_v50 }
  0x8b   :  { %v81_v6 = vpop.permute.xlu1 %80  ;;  %v71_v7 = vpop.permute.xlu0 %70 }
  0x8c   :  { %v110_v11 = vmul.f32 %v2047_v8, %v81_v6  ;;  %v108_v14 = vmul.f32 %v2047_v8, %v71_v7  ;;  %v94_v19 = vmul.f32 %v2045_v16, %v71_v7  ;;  %v96_v20 = vmul.f32 %v2045_v16, %v81_v6 }
  0x8d   :  { %v286_v28 = vmul.f32 %v2055_v25, %v71_v7  ;;  %v288_v29 = vmul.f32 %v2055_v25, %v81_v6 }
  0x8f   :  { %v86_v9 = vpop.permute.xlu1 %85  ;;  %v76_v10 = vpop.permute.xlu0 %75 }
  0x90   :  { %v111_v12 = vmul.f32 %v2047_v8, %v86_v9  ;;  %v109_v13 = vmul.f32 %v2047_v8, %v76_v10  ;;  %v95_v18 = vmul.f32 %v2045_v16, %v76_v10  ;;  %v97_v21 = vmul.f32 %v2045_v16, %v86_v9 }
  0x91   :  { %v287_v27 = vmul.f32 %v2055_v25, %v76_v10  ;;  %v289_v30 = vmul.f32 %v2055_v25, %v86_v9 }
  0x92   :  { %v2402_v15 = vpack.c.bf16 %v109_v13, %v108_v14  ;;  %v2406_v17 = vpack.c.bf16 %v111_v12, %v110_v11  ;;  %v2410_v22 = vpack.c.bf16 %v95_v18, %v94_v19  ;;  %v2414_v26 = vpack.c.bf16 %v97_v21, %v96_v20  ;;  %v406_v21 = vld [vmem:[%s3014_s2] sm:$0x1] }
  0x93   :  { %v2418_v31 = vpack.c.bf16 %v287_v27, %v286_v28  ;;  %v2422_v34 = vpack.c.bf16 %v289_v30, %v288_v29  ;;  %v2064_v30 = vld [vmem:[%s2990_s5 + $0x30] sm:$0xff] }
  0x94   :  { %2403 = vmatprep.subr.bf16.mxu0 %v2402_v15 }
  0x95   :  { %2405 = vmatpush3.bf16.msra.mxu0 %v2402_v15  ;;  %v410_v15 = vlaneseq }
  0x96   :  { %2407 = vmatprep.subr.bf16.mxu0 %v2406_v17 }
  0x97   :  { %v411_v16 = vshrl.u32 %v410_v15, 7 }
  0x99   :  { %2409 = vmatpush3.bf16.msra.mxu0 %v2406_v17  ;;  %v402_v17 = vld [vmem:[%s3013_s1] sm:$0x1]  ;;  %v2743_v18 = vsub.s32 0, %v411_v16 }
  0x9a   :  { %2411 = vmatprep.subr.bf16.mxu0 %v2410_v22 }
  0x9c   :  { %2217 = vmatmul.mubr.msk.f32.vlgmr.msra.gmra.mrb[0].mxu0 %vm115_vm0, %v2049_v23 }
  0x9d   :  { %2413 = vmatpush3.bf16.msra.mxu0 %v2410_v22  ;;  %2227 = vmatprep.mubr.msk.f32.mxu0 %vm115_vm0, %v98_v24 }
  0x9e   :  { %2415 = vmatprep.subr.bf16.mxu0 %v2414_v26 }
  0xa1   :  { %2417 = vmatpush3.bf16.msra.mxu0 %v2414_v26 }
  0xa2   :  { %2419 = vmatprep.subr.bf16.mxu0 %v2418_v31 }
  0xa4   :  { %2228 = vmatmul.mubr.msk.f32.vlgmr.msra.gmra.mrb[0].mxu0 %vm115_vm0, %v99_v32 }
  0xa5   :  { %2421 = vmatpush3.bf16.msra.mxu0 %v2418_v31  ;;  %2238 = vmatprep.mubr.msk.f32.mxu0 %vm115_vm0, %v2056_v33  ;;  %v2065_v31 = vld [vmem:[%s2990_s5 + $0x38] sm:$0xff] }
  0xa6   :  { %2423 = vmatprep.subr.bf16.mxu0 %v2422_v34 }
  0xa9   :  { %2425 = vmatpush3.bf16.msra.mxu0 %v2422_v34  ;;  %v2438_v34 = vpack.c.bf16 %v2065_v31, %v2064_v30  ;;  %v2088_v30 = vld [vmem:[%s2994_s9 + $0x40] sm:$0xff]  ;;  %v2089_v31 = vld [vmem:[%s2994_s9 + $0x48] sm:$0xff] }
  0xaa   :  { %2449 = vmatprep.subr.bf16.mxu0 %v2448_v41 }
  0xac   :  { %2239 = vmatmul.mubr.msk.f32.vlgmr.msra.gmra.mrb[0].mxu0 %vm115_vm0, %v2057_v35  ;;  %v2557_v35 = vmov 0.0|0.0  }
  0xad   :  { %2451 = vmatpush3.bf16.msra.mxu0 %v2448_v41 }
  0xae   :  { %2453 = vmatprep.subr.bf16.mxu0 %v2452_v47 }
  0xb1   :  { %2455 = vmatpush3.bf16.msra.mxu0 %v2452_v47  ;;  %v512_v47 = vld [vmem:[%s2993_s8] sm:$0xff] }
  0xb2   :  { %2465 = vmatprep.subr.bf16.mxu0 %v2557_v35 }
 0x17f   :  { %v2240_v51 = vpop.f32.mrb[0].mxu0 }
 0x180   :  { %v377_v52 = vsel %vm115_vm0, %v2240_v51, 0.0  ;;  %v388_v53 = vmul.f32 %v2240_v51, %v2240_v51  ;;  %v365_v54 = vpop.f32.mrb[1].mxu0 }
 0x181   :  { %v376_v55 = vsel %vm115_vm0, %v365_v54, 0.0  ;;  %v387_v56 = vmul.f32 %v365_v54, %v365_v54 }
 0x182   :  { %v390_v57 = vsel %vm115_vm0, %v388_v53, 0.0  ;;  %v378_v58 = vadd.f32 %v377_v52, %v376_v55  ;;  %v941_v52 = vld [vmem:[%s2994_s9] sm:$0xff]  ;;  %v942_v53 = vld [vmem:[%s2994_s9 + $0x8] sm:$0xff]  ;;  %v2082_v55 = vld [vmem:[%s2994_s9 + $0x30] sm:$0xff] }
 0x183   :  { %v389_v59 = vsel %vm115_vm0, %v387_v56, 0.0  ;;  %v2083_v56 = vld [vmem:[%s2994_s9 + $0x38] sm:$0xff] }
 0x184   :  { %v379_v60 = vrot.slane %v378_v58, 4  ;;  %v391_v61 = vadd.f32 %v390_v57, %v389_v59  ;;  %v2469_v57 = vpack.c.bf16 %v2083_v56, %v2082_v55  ;;  %v944_v59 = vld [vmem:[%s2994_s9 + $0x18] sm:$0xff]  ;;  %v2098_v55 = vld [vmem:[%s2998_s13 + $0x30] sm:$0xff] }
 0x185   :  { %v2099_v56 = vld [vmem:[%s2998_s13 + $0x38] sm:$0xff] }
 0x186   :  { %v380_v62 = vadd.f32 %v379_v60, %v378_v58  ;;  %v392_v63 = vrot.slane %v391_v61, 4  ;;  %v943_v58 = vld [vmem:[%s2994_s9 + $0x10] sm:$0xff] }
 0x187   :  { %v2463_v60 = vpack.c.bf16 %v944_v59, %v943_v58  ;;  %v1440_v58 = vld [vmem:[%s2998_s13 + $0x10] sm:$0xff]  ;;  %v1441_v59 = vld [vmem:[%s2998_s13 + $0x18] sm:$0xff] }
 0x188   :  { %v381_v0 = vrot.slane %v380_v62, 2  ;;  %v393_v1 = vadd.f32 %v392_v63, %v391_v61 }
 0x18a   :  { %v382_v2 = vadd.f32 %v381_v0, %v380_v62  ;;  %v394_v3 = vrot.slane %v393_v1, 2 }
 0x18c   :  { %v383_v4 = vrot.slane %v382_v2, 1  ;;  %v395_v5 = vadd.f32 %v394_v3, %v393_v1 }
 0x18e   :  { %v384_v6 = vadd.f32 %v383_v4, %v382_v2  ;;  %v396_v7 = vrot.slane %v395_v5, 1 }
 0x190   :  { %v386_v8 = vmul.f32 0.0625, %v384_v6  ;;  %v397_v9 = vadd.f32 %v396_v7, %v395_v5 }
 0x192   :  { %v398_v10 = vmul.f32 0.0625, %v397_v9  ;;  %v399_v11 = vmul.f32 %v386_v8, %v386_v8 }
 0x194   :  { %v400_v12 = vsub.f32 %v398_v10, %v399_v11 }
 0x196   :  { %v401_v13 = vmax.f32 %v400_v12, 0.0 }
 0x198   :  { %v403_v14 = vadd.f32 1e-05, %v401_v13 }
 0x19a   :  { %2524 = vrsqrt.f32 %v403_v14 }
 0x1a4   :  { %v2525_v19 = vpop.eup %2524 }
 0x1a5   :  { %v405_v20 = vmul.f32 %v2525_v19, %v402_v17 }
 0x1a7   :  { %v407_v22 = vmul.f32 %v405_v20, %v386_v8  ;;  %v413_v23 = vrot.slane %v405_v20, %v2743_v18 }
 0x1a9   :  { %v415_v24 = vmul.f32 %v413_v23, %v365_v54  ;;  %v416_v25 = vmul.f32 %v2240_v51, %v413_v23  ;;  %v408_v26 = vsub.f32 %v406_v21, %v407_v22  ;;  %v2460_v54 = vpack.c.bf16 %v942_v53, %v941_v52  ;;  %v919_v21 = vld [vmem:[%s2991_s6] sm:$0x1]  ;;  %v1439_v53 = vld [vmem:[%s2998_s13 + $0x8] sm:$0xff] }
 0x1aa   :  { %v1438_v52 = vld [vmem:[%s2998_s13] sm:$0xff] }
 0x1ab   :  { %v421_v27 = vrot.slane %v408_v26, %v2743_v18 }
 0x1ad   :  { %v423_v28 = vadd.f32 %v421_v27, %v415_v24  ;;  %v424_v29 = vadd.f32 %v421_v27, %v416_v25  ;;  %v923_v24 = vld [vmem:[%s2992_s7] sm:$0x1] }
 0x1af   :  { %v425_v32 = vmax.f32 %v423_v28, 0.0  ;;  %v426_v33 = vmax.f32 %v424_v29, 0.0 }
 0x1b1   :  { %2249 = vmatprep.mubr.msk.f32.mxu1 %vm115_vm0, %v425_v32  ;;  %2285 = vmatprep.mubr.msk.f32.mxu0 %vm115_vm0, %v425_v32 }
 0x1b2   :  { %2250 = vmatmul.mubr.msk.f32.vlgmr.msra.gmra.mrb[0].mxu1 %vm115_vm0, %v426_v33  ;;  %2286 = vmatmul.mubr.msk.f32.vlgmr.msra.gmra.mrb[2].mxu0 %vm115_vm0, %v426_v33 }
 0x1b3   :  { %2437 = vmatpush3.bf16.msra.mxu1 %v2434_v50  ;;  %2260 = vmatprep.mubr.msk.f32.mxu1 %vm115_vm0, %v425_v32  ;;  %v2081_v50 = vld [vmem:[%s2994_s9 + $0x28] sm:$0xff] }
 0x1b4   :  { %2439 = vmatprep.subr.bf16.mxu1 %v2438_v34  ;;  %2314 = vmatprep.mubr.msk.f32.mxu0 %vm2558_vm1, %v2559_v36  ;;  %v2466_v51 = vpack.c.bf16 %v2081_v50, %v2080_v49  ;;  %v2096_v49 = vld [vmem:[%s2998_s13 + $0x20] sm:$0xff]  ;;  %v2097_v50 = vld [vmem:[%s2998_s13 + $0x28] sm:$0xff] }
 0x1b6   :  { %2467 = vmatpush3.bf16.msra.mxu0 %v2466_v51  ;;  %v2484_v51 = vpack.c.bf16 %v2097_v50, %v2096_v49  ;;  %v1945_v49 = vld [vmem:[%s3002_s17] sm:$0xff]  ;;  %v1946_v50 = vld [vmem:[%s3002_s17 + $0x8] sm:$0xff] }
 0x1b7   :  { %2441 = vmatpush3.bf16.msra.mxu1 %v2438_v34  ;;  %2468 = vmatprep.subr.bf16.mxu0 %v2557_v35 }
 0x1b8   :  { %2442 = vmatprep.subr.bf16.mxu1 %v2557_v35 }
 0x1ba   :  { %2261 = vmatmul.mubr.msk.f32.vlgmr.msra.gmra.mrb[2].mxu1 %vm115_vm0, %v426_v33  ;;  %2470 = vmatpush3.bf16.msra.mxu0 %v2469_v57  ;;  %v2472_v33 = vpack.c.bf16 %v2089_v31, %v2088_v30  ;;  %v2487_v57 = vpack.c.bf16 %v2099_v56, %v2098_v55  ;;  %v2106_v30 = vld [vmem:[%s2998_s13 + $0x40] sm:$0xff]  ;;  %v2107_v31 = vld [vmem:[%s2998_s13 + $0x48] sm:$0xff] }
 0x1bb   :  { %2267 = vmatprep.mubr.msk.f32.mxu1 %vm2558_vm1, %v2559_v36  ;;  %2471 = vmatprep.subr.bf16.mxu0 %v2557_v35 }
 0x285   :  { %v2251_v37 = vpop.f32.mrb[0].mxu1  ;;  %v2287_v38 = vpop.f32.mrb[2].mxu0 }
 0x286   :  { %v503_v39 = vpop.f32.mrb[1].mxu1  ;;  %v813_v40 = vpop.f32.mrb[3].mxu0 }
 0x287   :  { %v2446_v41 = vpack.c.bf16 %v2251_v37, %v503_v39  ;;  %v2457_v42 = vpack.c.bf16 %v2287_v38, %v813_v40  ;;  %v2090_v37 = vld [vmem:[%s2994_s9 + $0x50] sm:$0xff]  ;;  %v2091_v38 = vld [vmem:[%s2994_s9 + $0x58] sm:$0xff]  ;;  %v2085_v40 = vld [vmem:[%s2997_s12 + $0x4] sm:$0xf] }
 0x288   :  { %v2475_v39 = vpack.c.bf16 %v2091_v38, %v2090_v37  ;;  %v2108_v37 = vld [vmem:[%s2998_s13 + $0x50] sm:$0xff]  ;;  %v2109_v38 = vld [vmem:[%s2998_s13 + $0x58] sm:$0xff] }
 0x28d   :  { %v2262_v43 = vpop.f32.mrb[2].mxu1 }
 0x28e   :  { %v584_v44 = vpop.f32.mrb[3].mxu1 }
 0x28f   :  { %v2443_v45 = vpack.c.bf16 %v2262_v43, %v584_v44 }
 0x291   :  { %2444 = vmatpush3.bf16.msra.mxu1 %v2443_v45  ;;  %v1018_v45 = vld [vmem:[%s2997_s12] sm:$0xf] }
 0x292   :  { %2445 = vmatprep.subr.bf16.mxu1 %v2557_v35 }
 0x294   :  { %2268 = vmatmul.mubr.msk.f32.vlgmr.msra.gmra.mrb[4].mxu1 %vm595_vm2, %v2068_v46 }
 0x295   :  { %2447 = vmatpush3.bf16.msra.mxu1 %v2446_v41  ;;  %2274 = vmatprep.mubr.msk.f32.mxu1 %vm2558_vm1, %v2559_v36 }
 0x296   :  { %2456 = vmatprep.subr.bf16.mxu1 %v2557_v35 }
 0x29c   :  { %2275 = vmatmul.mubr.msk.f32.vlgmr.msra.gmra.mrb[4].mxu1 %vm595_vm2, %v512_v47 }
 0x29d   :  { %2458 = vmatpush3.bf16.msra.mxu1 %v2457_v42  ;;  %2292 = vmatprep.mubr.msk.f32.mxu1 %vm2558_vm1, %v2559_v36 }
 0x29e   :  { %2459 = vmatprep.subr.bf16.mxu1 %v2557_v35 }
 0x2a4   :  { %2293 = vmatmul.mubr.msk.f32.vlgmr.msra.gmra.mrb[4].mxu1 %vm595_vm2, %v2077_v48  ;;  %v2093_v48 = vld [vmem:[%s2997_s12 + $0x8] sm:$0xf] }
 0x2a5   :  { %2303 = vmatprep.mubr.msk.f32.mxu1 %vm2558_vm1, %v2559_v36  ;;  %2461 = vmatpush3.bf16.msra.mxu1 %v2460_v54  ;;  %v2478_v54 = vpack.c.bf16 %v1439_v53, %v1438_v52  ;;  %v1948_v52 = vld [vmem:[%s3002_s17 + $0x18] sm:$0xff] }
 0x2a6   :  { %2462 = vmatprep.subr.bf16.mxu1 %v2557_v35 }
 0x2a9   :  { %2464 = vmatpush3.bf16.msra.mxu1 %v2463_v60  ;;  %v2481_v60 = vpack.c.bf16 %v1441_v59, %v1440_v58 }
 0x2aa   :  { %2317 = vmatprep.subr.mxu1 %v2559_v36 }
 0x377   :  { %v893_v61 = vpop.f32.mrb[4].mxu1 }
 0x378   :  { %v898_v62 = vsel %vm115_vm0, %v893_v61, 0.0  ;;  %v907_v63 = vmul.f32 %v893_v61, %v893_v61  ;;  %v2294_v0 = vpop.f32.mrb[5].mxu1 }
 0x379   :  { %v899_v1 = vrot.slane %v898_v62, 4 }
 0x37a   :  { %v908_v2 = vsel %vm115_vm0, %v907_v63, 0.0 }
 0x37b   :  { %v900_v3 = vadd.f32 %v899_v1, %v898_v62  ;;  %v909_v4 = vrot.slane %v908_v2, 4 }
 0x37d   :  { %v901_v5 = vrot.slane %v900_v3, 2  ;;  %v910_v6 = vadd.f32 %v909_v4, %v908_v2 }
 0x37f   :  { %v902_v7 = vadd.f32 %v901_v5, %v900_v3  ;;  %v911_v8 = vrot.slane %v910_v6, 2 }
 0x381   :  { %v903_v9 = vrot.slane %v902_v7, 1  ;;  %v912_v10 = vadd.f32 %v911_v8, %v910_v6 }
 0x383   :  { %v904_v11 = vadd.f32 %v903_v9, %v902_v7  ;;  %v913_v12 = vrot.slane %v912_v10, 1 }
 0x385   :  { %v906_v13 = vmul.f32 0.125, %v904_v11  ;;  %v914_v14 = vadd.f32 %v913_v12, %v912_v10 }
 0x387   :  { %v915_v15 = vmul.f32 0.125, %v914_v14  ;;  %v916_v16 = vmul.f32 %v906_v13, %v906_v13 }
 0x389   :  { %v917_v17 = vsub.f32 %v915_v15, %v916_v16 }
 0x38b   :  { %v918_v19 = vmax.f32 %v917_v17, 0.0 }
 0x38d   :  { %v920_v20 = vadd.f32 1e-05, %v918_v19 }
 0x38f   :  { %2526 = vrsqrt.f32 %v920_v20 }
 0x399   :  { %v2527_v22 = vpop.eup %2526 }
 0x39a   :  { %v922_v23 = vmul.f32 %v2527_v22, %v919_v21  ;;  %v1416_v21 = vld [vmem:[%s2995_s10] sm:$0x1] }
 0x39c   :  { %v924_v25 = vmul.f32 %v922_v23, %v906_v13  ;;  %v930_v26 = vrot.slane %v922_v23, %v2743_v18 }
 0x39e   :  { %v925_v27 = vsub.f32 %v923_v24, %v924_v25  ;;  %v932_v28 = vmul.f32 %v930_v26, %v893_v61  ;;  %v1420_v24 = vld [vmem:[%s2996_s11] sm:$0x1] }
 0x3a0   :  { %v937_v29 = vrot.slane %v925_v27, %v2743_v18 }
 0x3a2   :  { %v939_v32 = vadd.f32 %v937_v29, %v932_v28 }
 0x3a4   :  { %v940_v34 = vmax.f32 %v939_v32, 0.0 }
 0x3a6   :  { %2304 = vmatmul.mubr.msk.f32.vlgmr.msra.gmra.mrb[6].mxu1 %vm115_vm0, %v940_v34  ;;  %2315 = vmatmul.mubr.msk.f32.vlgmr.msra.gmra.mrb[4].mxu0 %vm115_vm0, %v940_v34 }
 0x3a7   :  { %2473 = vmatpush3.bf16.msra.mxu0 %v2472_v33  ;;  %2335 = vmatprep.mubr.msk.f32.mxu0 %vm2558_vm1, %v2559_v36  ;;  %v2490_v33 = vpack.c.bf16 %v2107_v31, %v2106_v30 }
 0x3a8   :  { %2474 = vmatprep.subr.bf16.mxu0 %v2557_v35  ;;  %2319 = vmatprep.mubr.msk.f32.mxu1 %vm2558_vm1, %v2559_v36 }
 0x3ab   :  { %2476 = vmatpush3.bf16.msra.mxu0 %v2475_v39  ;;  %v2493_v39 = vpack.c.bf16 %v2109_v38, %v2108_v37 }
 0x3ac   :  { %2477 = vmatprep.subr.bf16.mxu0 %v2557_v35 }
 0x3ae   :  { %2336 = vmatmul.mubr.msk.f32.vlgmr.msra.gmra.mrb[6].mxu0 %vm115_vm0, %v940_v34 }
 0x3af   :  { %2351 = vmatprep.mubr.msk.f32.mxu0 %vm2558_vm1, %v2559_v36  ;;  %2479 = vmatpush3.bf16.msra.mxu0 %v2478_v54 }
 0x3b0   :  { %2480 = vmatprep.subr.bf16.mxu0 %v2557_v35 }
 0x3b3   :  { %2482 = vmatpush3.bf16.msra.mxu0 %v2481_v60 }
 0x3b4   :  { %2365 = vmatprep.subr.mxu0 %v2559_v36 }
 0x479   :  { %v1014_v41 = vpop.f32.mrb[6].mxu1  ;;  %v1090_v42 = vpop.f32.mrb[4].mxu0 }
 0x47a   :  { %v2305_v43 = vpop.f32.mrb[7].mxu1  ;;  %v2316_v44 = vpop.f32.mrb[5].mxu0  ;;  %2318 = vmatpush3.msra.mxu1 %v1090_v42 }
 0x47b   :  { %2320 = vmatmul.mubr.msk.f32.vlgmr.msra.gmra.mrb[8].mxu1 %vm1096_vm3, %v2085_v40  ;;  %2322 = vmatprep.subr.mxu1 %v2559_v36  ;;  %v2101_v40 = vld [vmem:[%s3001_s16 + $0x2] sm:$0x3] }
 0x47c   :  { %2323 = vmatpush3.msra.mxu1 %v1014_v41  ;;  %2324 = vmatprep.mubr.msk.f32.mxu1 %vm2558_vm1, %v2559_v36 }
 0x47d   :  { %2338 = vmatprep.subr.mxu1 %v2559_v36 }
 0x481   :  { %v1314_v46 = vpop.f32.mrb[6].mxu0 }
 0x482   :  { %v2337_v47 = vpop.f32.mrb[7].mxu0 }
 0x483   :  { %2325 = vmatmul.mubr.msk.f32.vlgmr.msra.gmra.mrb[8].mxu1 %vm1096_vm3, %v1018_v45  ;;  %v1515_v45 = vld [vmem:[%s3001_s16] sm:$0x3] }
 0x484   :  { %2339 = vmatpush3.msra.mxu1 %v1314_v46  ;;  %2340 = vmatprep.mubr.msk.f32.mxu1 %vm2558_vm1, %v2559_v36 }
 0x485   :  { %2483 = vmatprep.subr.bf16.mxu1 %v2557_v35 }
 0x48b   :  { %2341 = vmatmul.mubr.msk.f32.vlgmr.msra.gmra.mrb[8].mxu1 %vm1096_vm3, %v2093_v48  ;;  %v2111_v48 = vld [vmem:[%s3001_s16 + $0x4] sm:$0x3] }
 0x48c   :  { %2362 = vmatprep.mubr.msk.f32.mxu1 %vm2558_vm1, %v2559_v36  ;;  %2485 = vmatpush3.bf16.msra.mxu1 %v2484_v51  ;;  %v2496_v51 = vpack.c.bf16 %v1946_v50, %v1945_v49 }
 0x48d   :  { %2486 = vmatprep.subr.bf16.mxu1 %v2557_v35 }
 0x490   :  { %2488 = vmatpush3.bf16.msra.mxu1 %v2487_v57 }
 0x491   :  { %2489 = vmatprep.subr.bf16.mxu1 %v2557_v35 }
 0x55e   :  { %v1389_v61 = vpop.f32.mrb[8].mxu1 }
 0x55f   :  { %v1395_v62 = vsel %vm1394_vm4, %v1389_v61, 0.0  ;;  %v1404_v63 = vmul.f32 %v1389_v61, %v1389_v61  ;;  %v2342_v0 = vpop.f32.mrb[9].mxu1 }
 0x560   :  { %v1396_v1 = vrot.slane %v1395_v62, 4 }
 0x561   :  { %v1405_v2 = vsel %vm1394_vm4, %v1404_v63, 0.0 }
 0x562   :  { %v1397_v3 = vadd.f32 %v1396_v1, %v1395_v62  ;;  %v1406_v4 = vrot.slane %v1405_v2, 4 }
 0x564   :  { %v1398_v5 = vrot.slane %v1397_v3, 2  ;;  %v1407_v6 = vadd.f32 %v1406_v4, %v1405_v2 }
 0x566   :  { %v1399_v7 = vadd.f32 %v1398_v5, %v1397_v3  ;;  %v1408_v8 = vrot.slane %v1407_v6, 2 }
 0x568   :  { %v1400_v9 = vrot.slane %v1399_v7, 1  ;;  %v1409_v10 = vadd.f32 %v1408_v8, %v1407_v6 }
 0x56a   :  { %v1401_v11 = vadd.f32 %v1400_v9, %v1399_v7  ;;  %v1410_v12 = vrot.slane %v1409_v10, 1 }
 0x56c   :  { %v1403_v13 = vmul.f32 0.25, %v1401_v11  ;;  %v1411_v14 = vadd.f32 %v1410_v12, %v1409_v10  ;;  %v1923_v12 = vld [vmem:[%s2999_s14] sm:$0x1]  ;;  %s2560_s14 = smov [#allocation2]  }
 0x56d   :  { %s2037_s5 = sshll.u32 %s2560_s14, 4  ;;  %s2038_s5 = int_to_ptr.vmem [resolvable:$true] %s2037_s5 }
 0x56e   :  { %v1412_v15 = vmul.f32 0.25, %v1411_v14  ;;  %v1413_v16 = vmul.f32 %v1403_v13, %v1403_v13  ;;  %p2537_p1 = scmp.lt.s32.totalorder %s2038_s5, %s2038_s5 }
 0x570   :  { %v1414_v17 = vsub.f32 %v1412_v15, %v1413_v16  ;;  %v1927_v15 = vld [vmem:[%s3000_s15] sm:$0x1]  ;;  %s2532_s15 = scalar_lea.vmem %s2038_s5, 32 }
 0x571   :  { %p2533_p0 = scmp.ne.s32.totalorder %s2038_s5, %s2532_s15  ;;  %p2538_p2 = scmp.lt.s32.totalorder %s2532_s15, %s2532_s15 }
 0x572   :  { %v1415_v19 = vmax.f32 %v1414_v17, 0.0 }
 0x573   :  { %p2539_p3 = por %p2538_p2, %p2537_p1 }
 0x574   :  { %v1417_v20 = vadd.f32 1e-05, %v1415_v19 }
 0x575   :  { %p2540_p4 = pnand %p2539_p3, %p2533_p0 }
 0x576   :  { %2528 = vrsqrt.f32 %v1417_v20 }
 0x580   :  { %v2529_v22 = vpop.eup %2528 }
 0x581   :  { %v1419_v23 = vmul.f32 %v2529_v22, %v1416_v21 }
 0x583   :  { %v1421_v25 = vmul.f32 %v1419_v23, %v1403_v13  ;;  %v1427_v26 = vrot.slane %v1419_v23, %v2743_v18 }
 0x585   :  { %v1422_v27 = vsub.f32 %v1420_v24, %v1421_v25  ;;  %v1429_v28 = vmul.f32 %v1427_v26, %v1389_v61  ;;  %v2114_v24 = vld [vmem:[%s3003_s18] ss:$0 sm:$0xff] }
 0x587   :  { %v1434_v29 = vrot.slane %v1422_v27, %v2743_v18 }
 0x589   :  { %v1436_v32 = vadd.f32 %v1434_v29, %v1429_v28 }
 0x58b   :  { %v1437_v34 = vmax.f32 %v1436_v32, 0.0 }
 0x58d   :  { %2352 = vmatmul.mubr.msk.f32.vlgmr.msra.gmra.mrb[8].mxu0 %vm115_vm0, %v1437_v34  ;;  %2363 = vmatmul.mubr.msk.f32.vlgmr.msra.gmra.mrb[10].mxu1 %vm115_vm0, %v1437_v34 }
 0x58e   :  { %2491 = vmatpush3.bf16.msra.mxu1 %v2490_v33  ;;  %2383 = vmatprep.mubr.msk.f32.mxu1 %vm2558_vm1, %v2559_v36 }
 0x58f   :  { %2492 = vmatprep.subr.bf16.mxu1 %v2557_v35  ;;  %2367 = vmatprep.mubr.msk.f32.mxu0 %vm2558_vm1, %v2559_v36 }
 0x592   :  { %2494 = vmatpush3.bf16.msra.mxu1 %v2493_v39 }
 0x593   :  { %2495 = vmatprep.subr.bf16.mxu1 %v2557_v35 }
 0x595   :  { %2384 = vmatmul.mubr.msk.f32.vlgmr.msra.gmra.mrb[12].mxu1 %vm115_vm0, %v1437_v34 }
 0x596   :  { %2399 = vmatprep.mubr.msk.f32.mxu1 %vm2558_vm1, %v2559_v36  ;;  %2497 = vmatpush3.bf16.msra.mxu1 %v2496_v51 }
 0x597   :  { %2498 = vmatprep.subr.bf16.mxu1 %v2557_v35 }
 0x660   :  { %v1511_v41 = vpop.f32.mrb[8].mxu0  ;;  %v1587_v42 = vpop.f32.mrb[10].mxu1 }
 0x661   :  { %v2353_v43 = vpop.f32.mrb[9].mxu0  ;;  %v2364_v44 = vpop.f32.mrb[11].mxu1  ;;  %2366 = vmatpush3.msk.msra.mxu0 %vm1597_vm5, %v1587_v42 }
 0x662   :  { %2368 = vmatmul.mubr.msk.f32.vlgmr.msra.gmra.mrb[10].mxu0 %vm1593_vm6, %v2101_v40  ;;  %2370 = vmatprep.subr.mxu0 %v2559_v36 }
 0x663   :  { %2371 = vmatpush3.msk.msra.mxu0 %vm1597_vm5, %v1511_v41  ;;  %2372 = vmatprep.mubr.msk.f32.mxu0 %vm2558_vm1, %v2559_v36 }
 0x664   :  { %2386 = vmatprep.subr.mxu0 %v2559_v36 }
 0x668   :  { %v1818_v46 = vpop.f32.mrb[12].mxu1 }
 0x669   :  { %v2385_v47 = vpop.f32.mrb[13].mxu1 }
 0x66a   :  { %2373 = vmatmul.mubr.msk.f32.vlgmr.msra.gmra.mrb[10].mxu0 %vm1593_vm6, %v1515_v45 }
 0x66b   :  { %2387 = vmatpush3.msk.msra.mxu0 %vm1597_vm5, %v1818_v46  ;;  %2388 = vmatprep.mubr.msk.f32.mxu0 %vm2558_vm1, %v2559_v36  ;;  %v1947_v36 = vld [vmem:[%s3002_s17 + $0x10] sm:$0xff] }
 0x66c   :  { %v2499_v53 = vpack.c.bf16 %v1948_v52, %v1947_v36 }
 0x66e   :  { %2500 = vmatpush3.bf16.msra.mxu1 %v2499_v53 }
 0x672   :  { %2389 = vmatmul.mubr.msk.f32.vlgmr.msra.gmra.mrb[10].mxu0 %vm1593_vm6, %v2111_v48 }
 0x745   :  { %v1896_v54 = vpop.f32.mrb[10].mxu0 }
 0x746   :  { %v1902_v55 = vsel %vm1901_vm7, %v1896_v54, 0.0  ;;  %v1911_v56 = vmul.f32 %v1896_v54, %v1896_v54  ;;  %v2390_v57 = vpop.f32.mrb[11].mxu0 }
 0x747   :  { %v1903_v58 = vrot.slane %v1902_v55, 4 }
 0x748   :  { %v1912_v59 = vsel %vm1901_vm7, %v1911_v56, 0.0 }
 0x749   :  { %v1904_v60 = vadd.f32 %v1903_v58, %v1902_v55  ;;  %v1913_v61 = vrot.slane %v1912_v59, 4 }
 0x74b   :  { %v1905_v35 = vrot.slane %v1904_v60, 2  ;;  %v1914_v62 = vadd.f32 %v1913_v61, %v1912_v59 }
 0x74d   :  { %v1906_v63 = vadd.f32 %v1905_v35, %v1904_v60  ;;  %v1915_v0 = vrot.slane %v1914_v62, 2 }
 0x74f   :  { %v1907_v1 = vrot.slane %v1906_v63, 1  ;;  %v1916_v2 = vadd.f32 %v1915_v0, %v1914_v62 }
 0x751   :  { %v1908_v3 = vadd.f32 %v1907_v1, %v1906_v63  ;;  %v1917_v4 = vrot.slane %v1916_v2, 1 }
 0x753   :  { %v1910_v5 = vmul.f32 0.5, %v1908_v3  ;;  %v1918_v6 = vadd.f32 %v1917_v4, %v1916_v2 }
 0x755   :  { %v1919_v7 = vmul.f32 0.5, %v1918_v6  ;;  %v1920_v8 = vmul.f32 %v1910_v5, %v1910_v5 }
 0x757   :  { %v1921_v9 = vsub.f32 %v1919_v7, %v1920_v8 }
 0x759   :  { %v1922_v10 = vmax.f32 %v1921_v9, 0.0 }
 0x75b   :  { %v1924_v11 = vadd.f32 1e-05, %v1922_v10 }
 0x75d   :  { %2530 = vrsqrt.f32 %v1924_v11 }
 0x767   :  { %v2531_v13 = vpop.eup %2530 }
 0x768   :  { %v1926_v14 = vmul.f32 %v2531_v13, %v1923_v12 }
 0x76a   :  { %v1928_v16 = vmul.f32 %v1926_v14, %v1910_v5  ;;  %v1934_v17 = vrot.slane %v1926_v14, %v2743_v18 }
 0x76c   :  { %v1929_v19 = vsub.f32 %v1927_v15, %v1928_v16  ;;  %v1936_v20 = vmul.f32 %v1934_v17, %v1896_v54 }
 0x76e   :  { %v1941_v21 = vrot.slane %v1929_v19, %v2743_v18 }
 0x770   :  { %v1943_v22 = vadd.f32 %v1941_v21, %v1936_v20 }
 0x772   :  { %v1944_v23 = vmax.f32 %v1943_v22, 0.0 }
 0x774   :  { %2400 = vmatmul.mubr.msk.f32.vlgmr.msra.gmra.mrb[14].mxu1 %vm115_vm0, %v1944_v23 }
 0x847   :  { %v2025_v25 = vpop.f32.mrb[14].mxu1 }
 0x848   :  { %v2026_v26 = vadd.f32 %v2114_v24, %v2025_v25  ;;  %v2401_v27 = vpop.f32.mrb[15].mxu1 }
 0x84a   :  { %2030 = vst.msk [vmem:[#allocation2] sm:$0x3] %vm2029_vm8, %v2026_v26 }
 0x84b   :  { %2543 = shalt.err (!%p2540_p4)
}
 0x84c   :  { %s2544_s10 = scalar_lea.hbm %s3004_s19, 32 }
 0x84d   :  { %p2545_p5 = scmp.ne.s32.totalorder %s3004_s19, %s2544_s10  ;;  %p2548_p6 = scmp.lt.u32.totalorder %s2544_s10, %s3004_s19 }
 0x84f   :  { %p2550_p7 = pnand %p2548_p6, %p2545_p5 }
 0x851   :  { %2553 = shalt.err (!%p2550_p7)
}
 0x852   :  { %2040 = dma.vmem_to_hbm [thread:$0]  %s2038_s5, 32, %s3004_s19, [#allocation3]  }
 0x853   :  { %2554 = dma.done.wait [#allocation3], 32  }
 0x854   :  { %2555 = vsyncadd [#allocation3], 4294967264 }
 0x855   :  { %2044 = vsyncpa [#allocation3], 1 }

</bundles_post_ra>
